<compile_context>
chip_gen: v7x
topology: tpu7x:2x2x1
jax: 0.10.0
libtpu: 0.0.40
codegen_flags: <defaults>
</compile_context>

<pallas_src>
import jax
import jax.numpy as jnp
from jax.experimental import pallas as pl
from jax.experimental.pallas import tpu as pltpu

_NEG_BIG = -1e30  # finite "-inf" bias for padded class columns


def mlp_softmax_kernel(x_ref, w1_ref, b1_ref, w2_ref, b2_ref, out_ref, acc_ref):
    """One (batch-tile, K-tile) grid step of fc1 -> ReLU -> fc2 -> softmax."""
    k = pl.program_id(1)

    @pl.when(k == 0)
    def _():
        acc_ref[...] = jnp.zeros_like(acc_ref)

    # fc1 partial sum over this K tile. x arrives in its stored f32 dtype and
    # is cast to bf16 here (cast hides under the MXU / x DMA); accumulate f32.
    acc_ref[...] += jnp.dot(
        x_ref[...].astype(jnp.bfloat16), w1_ref[...],
        preferred_element_type=jnp.float32)

    @pl.when(k == pl.num_programs(1) - 1)
    def _():
        h = jnp.maximum(acc_ref[...] + b1_ref[...], 0.0)      # bias + ReLU (f32)
        logits = jnp.dot(h.astype(w2_ref.dtype), w2_ref[...],
                         preferred_element_type=jnp.float32) + b2_ref[...]
        # Softmax over the lane-padded class axis. Padded columns carry a
        # -1e30 bias (and zero weights), so exp() underflows to exactly 0 and
        # the real classes sum to 1. Exact divide so rows normalize to 1 up to
        # f32 rounding (approx reciprocal was not accurate enough).
        m = jnp.max(logits, axis=-1, keepdims=True)
        e = jnp.exp(logits - m)
        out_ref[...] = (e / jnp.sum(e, axis=-1, keepdims=True)).astype(out_ref.dtype)
        # TODO(synk): for output_dim==2 a sigmoid(logit1 - logit0) epilogue
        # would skip the 128-lane exp and both cross-lane reduces entirely.


def _round_up(x, m):
    return (x + m - 1) // m * m


def prepare_params(w1, b1, w2, b2):
    """Pad + cast the model parameters once (outside the per-call path).

    Weights are stored pre-transposed ([in, out]) relative to nn.Linear.
    Padded w2 columns are zero and padded b2 columns are -1e30 so padded
    classes contribute exactly 0 to the softmax.
    """
    D, H = w1.shape
    O = w2.shape[1]
    D_pad = _round_up(D, 128)
    H_pad = _round_up(H, 128)
    O_pad = _round_up(max(O, 128), 128)          # lane-dense output

    w1p = jnp.zeros((D_pad, H_pad), jnp.bfloat16).at[:D, :H].set(
        w1.astype(jnp.bfloat16))
    b1p = jnp.zeros((1, H_pad), jnp.float32).at[0, :H].set(
        b1.reshape(-1).astype(jnp.float32))
    w2p = jnp.zeros((H_pad, O_pad), jnp.bfloat16).at[:H, :O].set(
        w2.astype(jnp.bfloat16))
    b2p = jnp.full((1, O_pad), _NEG_BIG, jnp.float32).at[0, :O].set(
        b2.reshape(-1).astype(jnp.float32))
    return dict(w1=w1p, b1=b1p, w2=w2p, b2=b2p, D=D, O=O)


def _vmem_limit_bytes(tm, tk, H_pad, O_pad):
    footprint = (
        2 * tm * tk * 4            # x tile (f32), double-buffered
        + 2 * tk * H_pad * 2       # w1 tile (bf16), double-buffered over K
        + 1 * H_pad * 4            # b1 (single-buffered)
        + 1 * H_pad * O_pad * 2    # w2 (single-buffered)
        + 1 * O_pad * 4            # b2 (single-buffered)
        + 2 * tm * O_pad * 4       # out tile (f32), double-buffered
        + tm * H_pad * 4           # f32 fc1 accumulator scratch
    )
    try:
        cap = int(pltpu.get_tpu_info().vmem_capacity_bytes)
    except Exception:
        cap = 64 * 1024 * 1024     # conservative: v7x per-TC VMEM
    # Leave headroom for compiler-internal scratch / spills: never request
    # more than 3/4 of physical VMEM and never above 64 MiB (~48 MiB on v7x).
    ceiling = min((cap * 3) // 4, 64 * 1024 * 1024)
    return int(min(max(2 * footprint, 32 * 1024 * 1024), ceiling))


def text_classification_forward(x, params, *, block_b=128, block_k=2048):
    """x: [B, D] float32 (stored dtype). params: output of prepare_params()."""
    w1p, b1p, w2p, b2p = params["w1"], params["b1"], params["w2"], params["b2"]
    D, O = params["D"], params["O"]
    D_pad, H_pad = w1p.shape
    O_pad = w2p.shape[1]
    B = x.shape[0]
    assert x.shape[1] == D

    # Feature axis: only touched when D % 128 != 0 (no per-call copy/cast in
    # the common case where the TF-IDF feature dim is already 128-aligned).
    if D_pad != D:
        # TODO(synk): mask the final K tile in-kernel instead of padding x.
        x = jnp.pad(x, ((0, 0), (0, D_pad - D)))

    # Batch tile: multiple of 8; guarantee >=2 tiles when possible so the
    # "parallel" batch axis shards across both TensorCores on v7x.
    B8 = _round_up(B, 8)
    tm = min(block_b, B8)
    if B8 // tm < 2 and B8 >= 16:
        tm = max(8, _round_up(B8 // 2, 8))
    B_pad = _round_up(B8, tm)
    if B_pad != B:
        x = jnp.pad(x, ((0, B_pad - B), (0, 0)))

    # K tile over the (potentially huge) feature dim: a multiple of 128 that
    # divides D_pad, at most ~block_k.
    tk = min(_round_up(block_k, 128), D_pad)
    while D_pad % tk != 0:
        tk -= 128
    grid = (B_pad // tm, D_pad // tk)

    resident = dict(pipeline_mode=pl.Buffered(1))  # constant-index operands

    out = pl.pallas_call(
        mlp_softmax_kernel,
        out_shape=jax.ShapeDtypeStruct((B_pad, O_pad), jnp.float32),
        grid_spec=pltpu.PrefetchScalarGridSpec(
            num_scalar_prefetch=0,
            grid=grid,
            in_specs=[
                pl.BlockSpec((tm, tk), lambda i, k: (i, k)),       # x: B/K tiles
                pl.BlockSpec((tk, H_pad), lambda i, k: (k, 0)),    # w1: K tiles
                pl.BlockSpec((1, H_pad), lambda i, k: (0, 0), **resident),   # b1
                pl.BlockSpec((H_pad, O_pad), lambda i, k: (0, 0), **resident),  # w2
                pl.BlockSpec((1, O_pad), lambda i, k: (0, 0), **resident),   # b2
            ],
            out_specs=pl.BlockSpec((tm, O_pad), lambda i, k: (i, 0)),
            scratch_shapes=[pltpu.VMEM((tm, H_pad), jnp.float32)],
        ),
        compiler_params=pltpu.CompilerParams(
            dimension_semantics=("parallel", "arbitrary"),   # K axis last
            vmem_limit_bytes=_vmem_limit_bytes(tm, tk, H_pad, O_pad),
        ),
    )(x, w1p, b1p, w2p, b2p)
    return out[:B, :O]


def _reference(x, w1, b1, w2, b2):
    h = jnp.maximum(x @ w1 + b1.reshape(1, -1), 0.0)
    return jax.nn.softmax(h @ w2 + b2.reshape(1, -1), axis=1)


if __name__ == "__main__":
    # Small shapes consistent with the module: batch=8, input_dim=256 (TF-IDF
    # feature dim shrunk for the test), hidden_dim=128, output_dim=2.
    B, D, H, O = 8, 256, 128, 2

    key = jax.random.PRNGKey(0)
    kx, kw1, kb1, kw2, kb2 = jax.random.split(key, 5)

    x = jax.random.normal(kx, (B, D), dtype=jnp.float32)
    # nn.Linear-style init (uniform +/- 1/sqrt(fan_in)), stored transposed
    # ([in, out]) relative to nn.Linear's [out, in].
    w1 = jax.random.uniform(kw1, (D, H), jnp.float32,
                            -1.0 / jnp.sqrt(D), 1.0 / jnp.sqrt(D))
    b1 = jax.random.uniform(kb1, (H,), jnp.float32,
                            -1.0 / jnp.sqrt(D), 1.0 / jnp.sqrt(D))
    w2 = jax.random.uniform(kw2, (H, O), jnp.float32,
                            -1.0 / jnp.sqrt(H), 1.0 / jnp.sqrt(H))
    b2 = jax.random.uniform(kb2, (O,), jnp.float32,
                            -1.0 / jnp.sqrt(H), 1.0 / jnp.sqrt(H))

    # Parameters padded / cast once, outside the per-call forward path.
    params = prepare_params(w1, b1, w2, b2)

    # block_k=128 -> 2 K tiles at D=256, exercising the accumulator path.
    out = jax.block_until_ready(
        text_classification_forward(x, params, block_b=128, block_k=128))
    ref = _reference(x, w1, b1, w2, b2)
    assert out.shape == (B, O)
    # bf16 matmul inputs (f32 accumulation) -> relaxed tolerance vs f32 ref.
    assert jnp.allclose(out, ref, atol=2e-2, rtol=2e-2), (out, ref)
    # Exact softmax normalization (no approx reciprocal).
    assert jnp.allclose(jnp.sum(out, axis=1), 1.0, atol=1e-5)

    # Exercise multiple batch tiles + padded batch (B=40 with 16-row tiles).
    B2 = 40
    x2 = jax.random.normal(jax.random.PRNGKey(1), (B2, D), dtype=jnp.float32)
    out2 = jax.block_until_ready(
        text_classification_forward(x2, params, block_b=16, block_k=128))
    ref2 = _reference(x2, w1, b1, w2, b2)
    assert out2.shape == (B2, O)
    assert jnp.allclose(out2, ref2, atol=2e-2, rtol=2e-2)
    assert jnp.allclose(jnp.sum(out2, axis=1), 1.0, atol=1e-5)

    print("KERNEL_OK")
</pallas_src>

<mosaic_0001>
module attributes {stable_mosaic.version = 11 : i64} {
  func.func @mlp_softmax_kernel(%arg0: i32, %arg1: i32, %arg2: memref<8x128xf32, #tpu.memory_space<vmem>>, %arg3: memref<128x128xbf16, #tpu.memory_space<vmem>>, %arg4: memref<1x128xf32, #tpu.memory_space<vmem>>, %arg5: memref<128x128xbf16, #tpu.memory_space<vmem>>, %arg6: memref<1x128xf32, #tpu.memory_space<vmem>>, %arg7: memref<8x128xf32, #tpu.memory_space<vmem>>, %arg8: memref<8x128xf32, #tpu.memory_space<vmem>>) attributes {dimension_semantics = [#tpu.dimension_semantics<parallel>, #tpu.dimension_semantics<arbitrary>], iteration_bounds = array<i64: 1, 2>, scalar_prefetch = 0 : i64, scratch_operands = 1 : i64, tpu.core_type = #tpu.core_type<tc>, window_params = [{transform_indices = @transform_0, window_bounds = array<i64: 8, 128>}, {transform_indices = @transform_1, window_bounds = array<i64: 128, 128>}, {pipeline_mode = #tpu.pipeline_mode<synchronous>, transform_indices = @transform_2, window_bounds = array<i64: 1, 128>}, {pipeline_mode = #tpu.pipeline_mode<synchronous>, transform_indices = @transform_3, window_bounds = array<i64: 128, 128>}, {pipeline_mode = #tpu.pipeline_mode<synchronous>, transform_indices = @transform_4, window_bounds = array<i64: 1, 128>}, {transform_indices = @transform_5, window_bounds = array<i64: 8, 128>}]} {
    %c0_i32 = arith.constant 0 : i32
    %0 = arith.cmpi eq, %arg1, %c0_i32 : i32
    %1 = arith.extui %0 : i1 to i32
    %c0_i32_0 = arith.constant 0 : i32
    %2 = arith.cmpi ne, %1, %c0_i32_0 : i32
    scf.if %2 {
      %cst_9 = arith.constant 0.000000e+00 : f32
      %13 = vector.broadcast %cst_9 : f32 to vector<8x128xf32>
      %c0_10 = arith.constant 0 : index
      %c0_11 = arith.constant 0 : index
      %14 = vector.load %arg8[%c0_10, %c0_11] : memref<8x128xf32, #tpu.memory_space<vmem>>, vector<8x128xf32>
      tpu.vector_store %arg8[%c0_10, %c0_11], %13 {strides = array<i32>} : memref<8x128xf32, #tpu.memory_space<vmem>>, vector<8x128xf32>,
    } else {
    }
    %c0 = arith.constant 0 : index
    %c0_1 = arith.constant 0 : index
    %3 = vector.load %arg8[%c0, %c0_1] : memref<8x128xf32, #tpu.memory_space<vmem>>, vector<8x128xf32>
    %c0_2 = arith.constant 0 : index
    %c0_3 = arith.constant 0 : index
    %4 = vector.load %arg2[%c0_2, %c0_3] : memref<8x128xf32, #tpu.memory_space<vmem>>, vector<8x128xf32>
    %5 = arith.truncf %4 : vector<8x128xf32> to vector<8x128xbf16>
    %c0_4 = arith.constant 0 : index
    %c0_5 = arith.constant 0 : index
    %6 = vector.load %arg3[%c0_4, %c0_5] : memref<128x128xbf16, #tpu.memory_space<vmem>>, vector<128x128xbf16>
    %cst = arith.constant dense<0.000000e+00> : vector<8x128xf32>
    %7 = tpu.matmul %5, %6, %cst {dimension_numbers = #tpu.dot_dimension_numbers<[1], [0], [0], [1], [0, 0, 1, 1], [], []>} : vector<8x128xbf16>, vector<128x128xbf16>, vector<8x128xf32> -> vector<8x128xf32>
    %8 = arith.addf %3, %7 : vector<8x128xf32>
    %c0_6 = arith.constant 0 : index
    %c0_7 = arith.constant 0 : index
    %9 = vector.load %arg8[%c0_6, %c0_7] : memref<8x128xf32, #tpu.memory_space<vmem>>, vector<8x128xf32>
    tpu.vector_store %arg8[%c0_6, %c0_7], %8 {strides = array<i32>} : memref<8x128xf32, #tpu.memory_space<vmem>>, vector<8x128xf32>,
    %c1_i32 = arith.constant 1 : i32
    %10 = arith.cmpi eq, %arg1, %c1_i32 : i32
    %11 = arith.extui %10 : i1 to i32
    %c0_i32_8 = arith.constant 0 : i32
    %12 = arith.cmpi ne, %11, %c0_i32_8 : i32
    scf.if %12 {
      %c0_9 = arith.constant 0 : index
      %c0_10 = arith.constant 0 : index
      %13 = vector.load %arg8[%c0_9, %c0_10] : memref<8x128xf32, #tpu.memory_space<vmem>>, vector<8x128xf32>
      %c0_11 = arith.constant 0 : index
      %c0_12 = arith.constant 0 : index
      %14 = vector.load %arg4[%c0_11, %c0_12] : memref<1x128xf32, #tpu.memory_space<vmem>>, vector<1x128xf32>
      %15 = vector.broadcast %14 : vector<1x128xf32> to vector<8x128xf32>
      %16 = arith.addf %13, %15 : vector<8x128xf32>
      %cst_13 = arith.constant 0.000000e+00 : f32
      %17 = vector.broadcast %cst_13 : f32 to vector<8x128xf32>
      %18 = arith.maximumf %16, %17 : vector<8x128xf32>
      %19 = arith.truncf %18 : vector<8x128xf32> to vector<8x128xbf16>
      %c0_14 = arith.constant 0 : index
      %c0_15 = arith.constant 0 : index
      %20 = vector.load %arg5[%c0_14, %c0_15] : memref<128x128xbf16, #tpu.memory_space<vmem>>, vector<128x128xbf16>
      %cst_16 = arith.constant dense<0.000000e+00> : vector<8x128xf32>
      %21 = tpu.matmul %19, %20, %cst_16 {dimension_numbers = #tpu.dot_dimension_numbers<[1], [0], [0], [1], [0, 0, 1, 1], [], []>} : vector<8x128xbf16>, vector<128x128xbf16>, vector<8x128xf32> -> vector<8x128xf32>
      %c0_17 = arith.constant 0 : index
      %c0_18 = arith.constant 0 : index
      %22 = vector.load %arg6[%c0_17, %c0_18] : memref<1x128xf32, #tpu.memory_space<vmem>>, vector<1x128xf32>
      %23 = vector.broadcast %22 : vector<1x128xf32> to vector<8x128xf32>
      %24 = arith.addf %21, %23 : vector<8x128xf32>
      %cst_19 = arith.constant dense<0xFF800000> : vector<8xf32>
      %25 = vector.multi_reduction <maximumf>, %24, %cst_19 [1] : vector<8x128xf32> to vector<8xf32>
      %26 = vector.shape_cast %25 : vector<8xf32> to vector<8x1xf32>
      %27 = vector.broadcast %26 : vector<8x1xf32> to vector<8x128xf32>
      %28 = arith.subf %24, %27 : vector<8x128xf32>
      %29 = math.exp %28 : vector<8x128xf32>
      %cst_20 = arith.constant dense<0.000000e+00> : vector<8xf32>
      %30 = vector.multi_reduction <add>, %29, %cst_20 [1] : vector<8x128xf32> to vector<8xf32>
      %31 = vector.shape_cast %30 : vector<8xf32> to vector<8x1xf32>
      %32 = vector.broadcast %31 : vector<8x1xf32> to vector<8x128xf32>
      %33 = arith.divf %29, %32 : vector<8x128xf32>
      %c0_21 = arith.constant 0 : index
      %c0_22 = arith.constant 0 : index
      %34 = vector.load %arg7[%c0_21, %c0_22] : memref<8x128xf32, #tpu.memory_space<vmem>>, vector<8x128xf32>
      tpu.vector_store %arg7[%c0_21, %c0_22], %33 {strides = array<i32>} : memref<8x128xf32, #tpu.memory_space<vmem>>, vector<8x128xf32>,
    } else {
    }
    return
  }
  func.func @transform_0(%arg0: i32, %arg1: i32) -> (i32, i32) {
    %c0_i32 = arith.constant 0 : i32
    return %arg0, %arg1 : i32, i32
  }
  func.func @transform_1(%arg0: i32, %arg1: i32) -> (i32, i32) {
    %c0_i32 = arith.constant 0 : i32
    %c0_i32_0 = arith.constant 0 : i32
    return %arg1, %c0_i32 : i32, i32
  }
  func.func @transform_2(%arg0: i32, %arg1: i32) -> (i32, i32) {
    %c0_i32 = arith.constant 0 : i32
    %c0_i32_0 = arith.constant 0 : i32
    %c0_i32_1 = arith.constant 0 : i32
    return %c0_i32, %c0_i32_0 : i32, i32
  }
  func.func @transform_3(%arg0: i32, %arg1: i32) -> (i32, i32) {
    %c0_i32 = arith.constant 0 : i32
    %c0_i32_0 = arith.constant 0 : i32
    %c0_i32_1 = arith.constant 0 : i32
    return %c0_i32, %c0_i32_0 : i32, i32
  }
  func.func @transform_4(%arg0: i32, %arg1: i32) -> (i32, i32) {
    %c0_i32 = arith.constant 0 : i32
    %c0_i32_0 = arith.constant 0 : i32
    %c0_i32_1 = arith.constant 0 : i32
    return %c0_i32, %c0_i32_0 : i32, i32
  }
  func.func @transform_5(%arg0: i32, %arg1: i32) -> (i32, i32) {
    %c0_i32 = arith.constant 0 : i32
    %c0_i32_0 = arith.constant 0 : i32
    return %arg0, %c0_i32 : i32, i32
  }
}

</mosaic_0001>

<bundles_post_ra>
// kernel: tpu_custom_call.1
= control target key start
LH: loop header
LB: loop body
LE: loop exit
PB: predicated region body
PF: predicated region fallthrough
CT: control target
= control target key end

     0   :  { %10 = vsyncpa [#allocation4], 0  ;;  %s1325_s0 = inlined_call_operand.hbm [shape: f32[8,256], index: 0, kind: input, shape index: {}]   ;;  %s1326_s1 = inlined_call_operand.hbm [shape: bf16[256,128], index: 1, kind: input, shape index: {}]   ;;  %s1327_s2 = inlined_call_operand.vmem [shape: f32[1,128], index: 2, kind: input, shape index: {}]   ;;  %s1328_s3 = inlined_call_operand.hbm [shape: bf16[128,128], index: 3, kind: input, shape index: {}]   ;;  %s1329_s4 = inlined_call_operand.vmem [shape: f32[1,128], index: 4, kind: input, shape index: {}]   ;;  %s1330_s5 = inlined_call_operand.hbm [shape: f32[8,128], index: 5, kind: output, shape index: {}]  }
   0x1   :  { %12 = vsyncpa [#allocation4 + $0x1], 0 }
   0x2   :  { %13 = vsyncpa [#allocation7], 0 }
   0x3   :  { %15 = vsyncpa [#allocation7 + $0x1], 0 }
   0x4   :  { %16 = vsyncpa [#allocation5], 0  ;;  %s1079_s18 = smov 0   ;;  %s1081_s19 = smov 0  }
   0x5   :  { %s1083_s20 = smov 0   ;;  %s1085_s21 = smov 0  }
   0x6   :  { %s1087_s22 = smov 0   ;;  %s1089_s23 = smov 0  }
   0x7 LB: > { %s1108_s24 = sadd.s32 4294967295, %s1036_s23   ;;  %p56_p0 = scmp.ne.s32.totalorder %s1020_s19, %s1016_s18  ;;  %s1036_s23 = sphi %s1089_s23, %s22_s23   ;;  %s1032_s22 = sphi %s1087_s22, %s1350_s22   ;;  %s1028_s21 = sphi %s1085_s21, %s1349_s21   ;;  %s1024_s20 = sphi %s1083_s20, %s1348_s20   ;;  %s1020_s19 = sphi %s1081_s19, %s1347_s19   ;;  %s1016_s18 = sphi %s1079_s18, %s1346_s18  }
   0x8   : > { %p1331_p1 = scmp.eq.s32.totalorder %s1108_s24, 0  ;;  %p660_p2 = scmp.ge.s32.totalorder %s1036_s23, 1 }
   0x9   : > { %p182_p3 = scmp.lt.s32.totalorder %s1036_s23, 3  ;;  %s1038_s27 = smov [#allocation8]  }
   0xa   : > { %p1116_p4 = por %p1331_p1, %p56_p0  ;;  %s197_s28 = sshll.u32 %s1038_s27, 4  ;;  %s198_s28 = int_to_ptr.vmem [resolvable:$true] %s197_s28 }
   0xb   : > { %p1120_p5 = pnand %p660_p2, %p182_p3  ;;  %s31_s30 = sadd.s32 1, %s1032_s22 }
   0xc   : > { %s1336_s25 = scalar_select %p1116_p4, 1, 0 }
   0xd   : > { %s1337_s26 = scalar_select %p1120_p5, 1, 0 }
   0xe   : > { %p767_p6 = pneg %p1120_p5  ;;  %s860_s8 = scalar_lea.hbm %s1328_s3, 1024 }
   0xf   : > { %p861_p8 = scmp.ne.s32.totalorder %s1328_s3, %s860_s8  ;;  %p867_p12 = scmp.lt.u32.totalorder %s860_s8, %s1328_s3 }
  0x10   : > { %p1128_p7 = pnand %p767_p6, %p1331_p1 }
  0x12   : > { %p862_p9 = pneg %p1128_p7 }
  0x14   : > { %p863_p10 = pnand %p862_p9, %p861_p8 }
  0x16   : > { %p864_p11 = pneg %p863_p10 }
  0x18   : > { %p869_p13 = pnand %p867_p12, %p864_p11 }
  0x1a   : > { %872 = shalt.err (!%p869_p13)
}
  0x1b   : > { %s873_s13 = scalar_lea.vmem %s198_s28, 1024  ;;  %p881_p6 = scmp.lt.s32.totalorder %s198_s28, %s198_s28 }
  0x1c   : > { %p874_p0 = scmp.ne.s32.totalorder %s198_s28, %s873_s13  ;;  %p882_p1 = scmp.lt.s32.totalorder %s873_s13, %s873_s13 }
  0x1e   : > { %p876_p2 = pnand %p874_p0, %p862_p9  ;;  %p883_p4 = por %p882_p1, %p881_p6 }
  0x20   : > { %p877_p3 = pneg %p876_p2 }
  0x22   : > { %p884_p5 = pnand %p883_p4, %p877_p3 }
  0x24   : > { %887 = shalt.err (!%p884_p5)
}
  0x25   : > { %s1334_s14 = smov 64   ;;  %s1335_s15 = smov 4  }
  0x26   : > { %770 = dma.hbm_to_vmem [thread:$0]  (!%p1128_p7), %s1328_s3, 1024, %s198_s28, [#allocation7], %s1334_s14, %s1334_s14, %s1335_s15  }
  0x27   : > { %p32_p1 = scmp.ge.s32.totalorder %s31_s30, 2  ;;  %s43_s18 = sadd.s32 1, %s1024_s20 }
  0x28   : > { %p50_p4 = scmp.ne.s32.totalorder %s1024_s20, %s1020_s19  ;;  %p51_p5 = scmp.eq.s32.totalorder %s1036_s23, 0 }
  0x29   : > { %s1352_s30 = smov (%p32_p1, %s31_s30), 0  ;;  %p779_p9 = scmp.lt.s32.totalorder %s1036_s23, 2 }
  0x2a   : > { %p52_p8 = por %p51_p5, %p50_p4  ;;  %s39_s27 = ssub.s32 %s1032_s22, %s1352_s30 }
  0x2b   : > { %s1162_s6 = sand.u32 1, %s1024_s20   ;;  %p41_p10 = scmp.eq.s32.totalorder %s39_s27, 0 }
  0x2c   : > { %s663_s29 = sshll.u32 %s1162_s6, 3  ;;  %s664_s7 = sshll.u32 %s1032_s22, 7 }
  0x2d   : > { %s1167_s8 = scalar_select %p41_p10, %s1024_s20, %s43_s18  }
  0x2e   : > { %s1172_s10 = scalar_lea.hbm %s1325_s0, %s664_s7  ;;  %s218_s11 = scalar_lea.vmem [#allocation3], %s663_s29 }
  0x2f   : > { %s227_s12 = sshll.u32 %s218_s11, 4  ;;  %p1174_p7 = pnand %p779_p9, %p52_p8  ;;  %s1178_s12 = int_to_ptr.vmem [resolvable:$true] %s227_s12 }
  0x30   : > { %s665_s16 = sshll.u32 %s1162_s6, 6  ;;  %s215_s17 = scalar_lea.sflag [#allocation4], %s1162_s6 }
  0x31   : > { %s888_s18 = scalar_lea.hbm %s1172_s10, 128  ;;  %p890_p12 = pneg %p1174_p7 }
  0x32   : > { %p889_p11 = scmp.ne.s32.totalorder %s1172_s10, %s888_s18  ;;  %s893_s7 = scalar_lea.hbm %s1325_s0, 256 }
  0x33   : > { %p894_p2 = scmp.lt.u32.totalorder %s1172_s10, %s1325_s0  ;;  %p895_p3 = scmp.lt.u32.totalorder %s893_s7, %s888_s18 }
  0x34   : > { %p891_p13 = pnand %p890_p12, %p889_p11  ;;  %p897_p1 = scmp.lt.u32.totalorder %s888_s18, %s1172_s10 }
  0x35   : > { %p896_p6 = por %p895_p3, %p894_p2 }
  0x36   : > { %p892_p0 = pneg %p891_p13 }
  0x37   : > { %p898_p4 = por %p897_p1, %p896_p6 }
  0x39   : > { %p899_p5 = pnand %p898_p4, %p892_p0 }
  0x3b   : > { %902 = shalt.err (!%p899_p5)
}
  0x3c   : > { %s903_s11 = scalar_lea.vmem %s1178_s12, 128  ;;  %s1041_s27 = smov [#allocation3]  }
  0x3d   : > { %p904_p8 = scmp.ne.s32.totalorder %s1178_s12, %s903_s11  ;;  %s908_s29 = sshll.u32 %s1041_s27, 4  ;;  %s909_s29 = int_to_ptr.vmem [resolvable:$false] %s908_s29 }
  0x3e   : > { %s910_s28 = scalar_lea.vmem %s909_s29, 256  ;;  %p911_p11 = scmp.lt.s32.totalorder %s1178_s12, %s909_s29 }
  0x3f   : > { %p906_p9 = pnand %p904_p8, %p890_p12  ;;  %p912_p13 = scmp.lt.s32.totalorder %s910_s28, %s903_s11 }
  0x41   : > { %p907_p10 = pneg %p906_p9  ;;  %p913_p2 = por %p912_p13, %p911_p11 }
  0x43   : > { %p914_p3 = pnand %p913_p2, %p907_p10 }
  0x45   : > { %917 = shalt.err (!%p914_p3)
}
  0x46   : > { %774 = dma.hbm_to_vmem [thread:$0]  (!%p1174_p7), %s1172_s10, 128, %s1178_s12, %s215_s17  }
  0x47   : > { %s696_s18 = sshll.u32 %s1032_s22, 10  ;;  %s238_s7 = scalar_lea.vmem [#allocation6], %s665_s16 }
  0x48   : > { %s245_s9 = sshll.u32 %s238_s7, 4  ;;  %s234_s27 = sand.u32 1, %s1036_s23   ;;  %s1210_s9 = int_to_ptr.vmem [resolvable:$true] %s245_s9 }
  0x49   : > { %s1216_s28 = scalar_lea.hbm %s1326_s1, %s696_s18  ;;  %s1218_s14 = scalar_lea.sflag [#allocation7], %s234_s27 }
  0x4a   : > { %s918_s15 = scalar_lea.hbm %s1216_s28, 1024  ;;  %s923_s12 = scalar_lea.hbm %s1326_s1, 2048 }
  0x4b   : > { %p919_p0 = scmp.ne.s32.totalorder %s1216_s28, %s918_s15  ;;  %p924_p4 = scmp.lt.u32.totalorder %s1216_s28, %s1326_s1 }
  0x4c   : > { %p925_p5 = scmp.lt.u32.totalorder %s923_s12, %s918_s15  ;;  %p927_p9 = scmp.lt.u32.totalorder %s918_s15, %s1216_s28 }
  0x4d   : > { %p921_p6 = pnand %p919_p0, %p890_p12 }
  0x4e   : > { %p926_p8 = por %p925_p5, %p924_p4 }
  0x4f   : > { %p922_p1 = pneg %p921_p6 }
  0x50   : > { %p928_p10 = por %p927_p9, %p926_p8 }
  0x52   : > { %p929_p11 = pnand %p928_p10, %p922_p1 }
  0x54   : > { %932 = shalt.err (!%p929_p11)
}
  0x55   : > { %s933_s18 = scalar_lea.vmem %s1210_s9, 1024  ;;  %s1042_s7 = smov [#allocation6]  }
  0x56   : > { %p934_p13 = scmp.ne.s32.totalorder %s1210_s9, %s933_s18  ;;  %s938_s27 = sshll.u32 %s1042_s7, 4  ;;  %s939_s27 = int_to_ptr.vmem [resolvable:$false] %s938_s27 }
  0x57   : > { %s940_s11 = scalar_lea.vmem %s939_s27, 2048  ;;  %p941_p0 = scmp.lt.s32.totalorder %s1210_s9, %s939_s27 }
  0x58   : > { %p936_p2 = pnand %p934_p13, %p890_p12  ;;  %p942_p6 = scmp.lt.s32.totalorder %s940_s11, %s933_s18 }
  0x5a   : > { %p937_p3 = pneg %p936_p2  ;;  %p943_p4 = por %p942_p6, %p941_p0 }
  0x5c   : > { %p944_p5 = pnand %p943_p4, %p937_p3 }
  0x5e   : > { %947 = shalt.err (!%p944_p5)
}
  0x5f   : > { %s1340_s15 = smov 4   ;;  %s1341_s29 = smov 64  }
  0x60   : > { %777 = dma.hbm_to_vmem [thread:$0]  (!%p1174_p7), %s1216_s28, 1024, %s1210_s9, %s1218_s14, %s1341_s29, %s1341_s29, %s1340_s15  }
  0x61   : > { %p1342_p12 = scmp.ne.s32.totalorder %s1337_s26, 0 }
  0x62   : > { %s259_s6 = sand.u32 (!%p1342_p12), 1, %s1020_s19   ;;  %p1343_p1 = scmp.ne.s32.totalorder (!%p1342_p12), %s1336_s25, 0 }
  0x63   : > { %257 = sbr.rel (%p1342_p12) target bundleno = 935 (0x3a7), region = 40  ;;  %s669_s10 = sshll.u32 (!%p1342_p12), %s259_s6, 3 }
  0x64   : > { %s260_s12 = scalar_lea.sflag (!%p1342_p12), [#allocation4], %s259_s6  ;;  %s1250_s16 = scalar_lea.vmem (!%p1342_p12), [#allocation3], %s669_s10 }
  0x6a   : > { %999 = dma.done.wait (%p1343_p1), %s260_s12, 128  }
  0x6b   : > { %1001 = vsyncadd (%p1343_p1), %s260_s12, 4294967168  ;;  %s268_s13 = sand.u32 1, %s1108_s24   ;;  %s670_s17 = sshll.u32 %s259_s6, 6 }
  0x6c   : > { %s269_s14 = scalar_lea.sflag [#allocation7], %s268_s13  ;;  %s1257_s9 = scalar_lea.vmem [#allocation6], %s670_s17 }
  0x6d   : > { %1003 = dma.done.wait (%p1343_p1), %s269_s14, 1024  }
  0x6e   : > { %1005 = vsyncadd (%p1343_p1), %s269_s14, 4294966272  ;;  %p1344_p7 = scmp.eq.s32.totalorder %s1108_s24, 0 }
  0x70   : > { %1007 = dma.done.wait (%p1344_p7), [#allocation7], 1024   ;;  %p1345_p8 = pmov %p1344_p7 }
  0x71   : > { %p672_p9 = scmp.ne.s32.totalorder %s1028_s21, 0 }
  0x72   : > { %1009 = vsyncadd (%p1345_p8), [#allocation7], 4294966272  ;;  %v1043_v0 = vmov (!%p672_p9), 0.0  }
  0x73   : > { %308 = sbr.rel (%p672_p9) target bundleno = 122 (0x7a), region = 56  ;;  %309 = vst [vmem:[#allocation2] sm:$0xff] (!%p672_p9), %v1043_v0 }
  0x7a PF: > { %v840_v1 = vld [vmem:[%s1257_s9] sm:$0xff]   ;;  %v1044_v2 = vmov 0.0   ;;  %v841_v3 = vld [vmem:[%s1257_s9 + $0x8] sm:$0xff]   ;;  %vm1045_vm0 = vmmov 0   ;;  %v842_v4 = vld [vmem:[%s1257_s9 + $0x10] sm:$0xff]   ;;  %p681_p10 = scmp.ne.s32.totalorder %s1028_s21, 1 }
  0x7b   : > { %715 = vmatprep.subr.bf16.mxu0 %v1044_v2  ;;  %731 = vmatprep.mubr.msk.bf16.mxu0 %vm1045_vm0, %v1044_v2  ;;  %v843_v5 = vld [vmem:[%s1257_s9 + $0x18] sm:$0xff]   ;;  %v844_v6 = vld [vmem:[%s1257_s9 + $0x20] sm:$0xff]   ;;  %v845_v7 = vld [vmem:[%s1257_s9 + $0x28] sm:$0xff]   ;;  %v1046_v19 = vmov (!%p681_p10), 0.0   ;;  %vm1047_vm1 = vmmov (!%p681_p10), 0  }
  0x7c   : > { %716 = vmatpush3.bf16.msra.mxu0 %v840_v1  ;;  %v846_v8 = vld [vmem:[%s1257_s9 + $0x30] sm:$0xff]   ;;  %v847_v9 = vld [vmem:[%s1257_s9 + $0x38] sm:$0xff]   ;;  %v310_v12 = vld [vmem:[#allocation2] sm:$0xff] }
  0x7d   : > { %717 = vmatprep.subr.bf16.mxu0 %v1044_v2  ;;  %v311_v10 = vld [vmem:[%s1250_s16] sm:$0xff]  ;;  %v848_v18 = vld [vmem:[#allocation8] sm:$0xff] (!%p681_p10)   ;;  %v849_v20 = vld [vmem:[#allocation8 + $0x8] sm:$0xff] (!%p681_p10)  }
  0x7e   : > { %v312_v11 = vpack.c.bf16 %v311_v10, %v311_v10  ;;  %v850_v21 = vld [vmem:[#allocation8 + $0x10] sm:$0xff] (!%p681_p10)   ;;  %v851_v22 = vld [vmem:[#allocation8 + $0x18] sm:$0xff] (!%p681_p10)   ;;  %v852_v23 = vld [vmem:[#allocation8 + $0x20] sm:$0xff] (!%p681_p10)  }
  0x7f   : > { %v853_v24 = vld [vmem:[#allocation8 + $0x28] sm:$0xff] (!%p681_p10)   ;;  %v854_v28 = vld [vmem:[#allocation8 + $0x30] sm:$0xff] (!%p681_p10)   ;;  %v855_v30 = vld [vmem:[#allocation8 + $0x38] sm:$0xff] (!%p681_p10)  }
  0x80   : > { %718 = vmatpush3.bf16.msra.mxu0 %v841_v3  ;;  %v682_v26 = vld [vmem:[%s1327_s2] ss:$0 sm:$0xff] (!%p681_p10) }
  0x81   : > { %719 = vmatprep.subr.bf16.mxu0 %v1044_v2  ;;  %v683_v32 = vld [vmem:[%s1329_s4] ss:$0 sm:$0xff] (!%p681_p10) }
  0x84   : > { %720 = vmatpush3.bf16.msra.mxu0 %v842_v4 }
  0x85   : > { %721 = vmatprep.subr.bf16.mxu0 %v1044_v2 }
  0x88   : > { %722 = vmatpush3.bf16.msra.mxu0 %v843_v5 }
  0x89   : > { %723 = vmatprep.subr.bf16.mxu0 %v1044_v2 }
  0x8c   : > { %724 = vmatpush3.bf16.msra.mxu0 %v844_v6 }
  0x8d   : > { %725 = vmatprep.subr.bf16.mxu0 %v1044_v2 }
  0x90   : > { %726 = vmatpush3.bf16.msra.mxu0 %v845_v7 }
  0x91   : > { %727 = vmatprep.subr.bf16.mxu0 %v1044_v2 }
  0x94   : > { %728 = vmatpush3.bf16.msra.mxu0 %v846_v8 }
  0x95   : > { %729 = vmatprep.subr.bf16.mxu0 %v1044_v2 }
  0x98   : > { %730 = vmatpush3.bf16.msra.mxu0 %v847_v9 }
  0x99   : > { %735 = vmatprep.subr.bf16.mxu0 (!%p681_p10), %v1046_v19 }
  0x9b   : > { %732 = vmatmul.mubr.bf16.vlgmr.msra.gmra.mrb[0].mxu0 %v312_v11 }
  0x9c   : > { %736 = vmatpush3.bf16.msra.mxu0 (!%p681_p10), %v848_v18  ;;  %751 = vmatprep.mubr.msk.bf16.mxu0 (!%p681_p10), %vm1047_vm1, %v1046_v19 }
  0x9d   : > { %737 = vmatprep.subr.bf16.mxu0 (!%p681_p10), %v1046_v19 }
  0xa0   : > { %738 = vmatpush3.bf16.msra.mxu0 (!%p681_p10), %v849_v20 }
  0xa1   : > { %739 = vmatprep.subr.bf16.mxu0 (!%p681_p10), %v1046_v19 }
  0xa4   : > { %740 = vmatpush3.bf16.msra.mxu0 (!%p681_p10), %v850_v21 }
  0xa5   : > { %741 = vmatprep.subr.bf16.mxu0 (!%p681_p10), %v1046_v19 }
  0xa8   : > { %742 = vmatpush3.bf16.msra.mxu0 (!%p681_p10), %v851_v22 }
  0xa9   : > { %743 = vmatprep.subr.bf16.mxu0 (!%p681_p10), %v1046_v19 }
  0xac   : > { %744 = vmatpush3.bf16.msra.mxu0 (!%p681_p10), %v852_v23 }
  0xad   : > { %745 = vmatprep.subr.bf16.mxu0 (!%p681_p10), %v1046_v19 }
  0xb0   : > { %746 = vmatpush3.bf16.msra.mxu0 (!%p681_p10), %v853_v24 }
  0xb1   : > { %747 = vmatprep.subr.bf16.mxu0 (!%p681_p10), %v1046_v19 }
  0xb4   : > { %748 = vmatpush3.bf16.msra.mxu0 (!%p681_p10), %v854_v28 }
  0xb5   : > { %749 = vmatprep.subr.bf16.mxu0 (!%p681_p10), %v1046_v19 }
  0xb8   : > { %750 = vmatpush3.bf16.msra.mxu0 (!%p681_p10), %v855_v30 }
 0x16b   : > { %422 = sbr.rel (%p681_p10) target bundleno = 910 (0x38e), region = 60 }
 0x16e   : > { %v411_v13 = vpop.f32.mrb[0].mxu0 }
 0x16f   : > { %v417_v14 = vadd.f32 %v411_v13, %v310_v12  ;;  %v733_v15 = vpop.f32.mrb[1].mxu0 }
 0x170   : > { %v414_v16 = vpop.f32.mrb[2].mxu0 }
 0x171   : > { %418 = vst [vmem:[#allocation2] sm:$0xff] %v417_v14  ;;  %v734_v17 = vpop.f32.mrb[3].mxu0 }
 0x178   : > { %v423_v25 = vld [vmem:[#allocation2] sm:$0xff] }
 0x179   : > { %v431_v27 = vadd.f32 %v682_v26, %v423_v25 }
 0x17b   : > { %v432_v29 = vmax.f32 %v431_v27, 0.0 }
 0x17d   : > { %v433_v31 = vpack.c.bf16 %v432_v29, %v432_v29 }
 0x17f   : > { %752 = vmatmul.mubr.bf16.vlgmr.msra.gmra.mrb[0].mxu0 %v433_v31 }
 0x252   : > { %v539_v33 = vpop.f32.mrb[0].mxu0 }
 0x253   : > { %v540_v34 = vadd.f32 %v683_v32, %v539_v33  ;;  %v753_v35 = vpop.f32.mrb[1].mxu0 }
 0x254   : > { %v542_v36 = vpop.f32.mrb[2].mxu0 }
 0x255   : > { %545 = vmax.xlane.f32.xlu0 %v540_v34  ;;  %v754_v37 = vpop.f32.mrb[3].mxu0 }
 0x2e2   : > { %v546_v38 = vpop.xlane.xlu0 %545 }
 0x2e3   : > { %v547_v39 = vsub.f32 %v540_v34, %v546_v38 }
 0x2e5   : > { %v548_v40 = vmul.f32 1.442695, %v547_v39 }
 0x2e7   : > { %856 = vpow2.f32 %v548_v40 }
 0x2f1   : > { %v857_v41 = vpop.eup %856 }
 0x2f2   : > { %550 = vadd.xlane.f32.xlu0 %v857_v41 }
 0x37f   : > { %v551_v42 = vpop.xlane.xlu0 %550 }
 0x380   : > { %858 = vrcp.f32 %v551_v42 }
 0x38a   : > { %v859_v43 = vpop.eup %858 }
 0x38b   : > { %v553_v44 = vmul.f32 %v859_v43, %v857_v41 }
 0x38d   : > { %554 = vst [vmem:[#allocation9] sm:$0xff] %v553_v44 }
 0x38e PF: > { %p781_p11 = scmp.eq.s32.totalorder %s1108_s24, 1  ;;  %s1048_s18 = smov [#allocation9]  }
 0x38f   : > { %s564_s7 = sshll.u32 %s1048_s18, 4  ;;  %s565_s7 = int_to_ptr.vmem [resolvable:$true] %s564_s7 }
 0x390   : > { %s948_s27 = scalar_lea.vmem %s565_s7, 128  ;;  %p955_p0 = scmp.lt.s32.totalorder %s565_s7, %s565_s7 }
 0x391   : > { %p949_p13 = scmp.ne.s32.totalorder %s565_s7, %s948_s27  ;;  %p956_p6 = scmp.lt.s32.totalorder %s948_s27, %s948_s27 }
 0x393   : > { %p950_p2 = pnand %p949_p13, %p781_p11  ;;  %p957_p4 = por %p956_p6, %p955_p0 }
 0x395   : > { %p951_p3 = pneg %p950_p2 }
 0x397   : > { %p958_p5 = pnand %p957_p4, %p951_p3 }
 0x399   : > { %961 = shalt.err (!%p958_p5)
}
 0x39a   : > { %s962_s29 = scalar_lea.hbm %s1330_s5, 128 }
 0x39b   : > { %p963_p12 = scmp.ne.s32.totalorder %s1330_s5, %s962_s29  ;;  %p968_p8 = scmp.lt.u32.totalorder %s962_s29, %s1330_s5 }
 0x39d   : > { %p964_p1 = pnand %p963_p12, %p781_p11 }
 0x39f   : > { %p965_p7 = pneg %p964_p1 }
 0x3a1   : > { %p970_p9 = pnand %p968_p8, %p965_p7 }
 0x3a3   : > { %973 = shalt.err (!%p970_p9)
}
 0x3a4   : > { %764 = dma.vmem_to_hbm [thread:$0]  (%p781_p11), %s565_s7, 128, %s1330_s5, [#allocation5]  }
 0x3a5   : > { %1011 = dma.done.wait (%p781_p11), [#allocation5], 128  }
 0x3a6   : > { %1013 = vsyncadd (%p781_p11), [#allocation5], 4294967168 }
 0x3a7 PF: > { %s22_s23 = sadd.s32 1, %s1036_s23   ;;  %s1346_s18 = smov %s1020_s19 }
 0x3a8   : > { %p19_p10 = scmp.ge.s32.totalorder %s22_s23, 4   ;;  %s1347_s19 = smov %s1024_s20 }
 0x3a9   : > { %s1348_s20 = smov %s1167_s8  ;;  %s1349_s21 = smov %s1032_s22 }
 0x3aa   : > { %s1350_s22 = smov %s1352_s30  ;;  %21 = sbr.rel (!%p19_p10) target bundleno = 7 (0x7), region = 103 }
 0x3b1   :  { %577 = vsyncpa [#allocation4], 1 }
 0x3b2   :  { %579 = vsyncpa [#allocation4 + $0x1], 1 }
 0x3b3   :  { %580 = vsyncpa [#allocation7], 1 }
 0x3b4   :  { %582 = vsyncpa [#allocation7 + $0x1], 1 }
 0x3b5   :  { %583 = vsyncpa [#allocation5], 1 }
 0x3b6   :  { %585 = vsyncpa [#allocation5 + $0x1], 1 }

</bundles_post_ra>
